<compile_context>
chip_gen: v6e
topology: v6e:2x2x1
jax: 0.10.0
libtpu: 0.0.40
codegen_flags: <defaults>
</compile_context>

<pallas_src>
import functools

import jax
import jax.numpy as jnp
from jax import lax
from jax.experimental import pallas as pl
from jax.experimental.pallas import tpu as pltpu


def _round_up(x, m):
    return ((x + m - 1) // m) * m


def _pad_to(a, shape, dtype=None):
    pads = [(0, t - s) for s, t in zip(a.shape, shape)]
    a = jnp.pad(a, pads)
    return a.astype(dtype) if dtype is not None else a


def timuta_kernel(x_ref, win_ref, bin_ref, wh_ref, bh_ref,
                  wout_ref, bout_ref, o_ref, h_ref, *, hid_dim):
    """One grid step = (batch tile b, hidden layer l)."""
    l = pl.program_id(1)

    # ---- input linear (first layer step of each batch tile) -----------------
    @pl.when(l == 0)
    def _():
        x = x_ref[...].astype(jnp.bfloat16)
        h_ref[...] = (jnp.dot(x, win_ref[...],
                              preferred_element_type=jnp.float32)
                      + bin_ref[...])

    # ---- residual block l: relu(LN(h) @ Wl' + bl') + h -----------------------
    # (LN gain/bias already folded into Wl'/bl' by the wrapper.)
    h = h_ref[...]                                          # f32 (TB, H_P)
    # One-pass LayerNorm statistics.  Padded feature lanes of h are exactly
    # zero by construction, so summing over the padded width and dividing by
    # the true hid_dim reproduces PyTorch's (biased, eps=1e-5) LayerNorm.
    inv_n = jnp.float32(1.0 / hid_dim)
    s1 = jnp.sum(h, axis=-1, keepdims=True)
    s2 = jnp.sum(h * h, axis=-1, keepdims=True)
    mu = s1 * inv_n
    var = s2 * inv_n - mu * mu
    hn = (h - mu) * lax.rsqrt(var + 1e-5)
    # Padded lanes of hn are non-zero, but the corresponding rows of Wl' are
    # zero-padded so they contribute nothing to the matmul.
    z = (jnp.dot(hn.astype(jnp.bfloat16), wh_ref[0],
                 preferred_element_type=jnp.float32)
         + bh_ref[0])
    # TODO(synk): nn.Dropout is identity in eval mode; training-mode mask
    #             (pltpu.prng_random_bits) intentionally not emitted.
    h = jnp.maximum(z, 0.0) + h                             # ReLU + residual
    h_ref[...] = h

    # ---- output linear + dropout(identity) + ReLU (last layer step) ---------
    @pl.when(l == pl.num_programs(1) - 1)
    def _():
        out = (jnp.dot(h.astype(jnp.bfloat16), wout_ref[...],
                       preferred_element_type=jnp.float32)
               + bout_ref[...])
        o_ref[...] = jnp.maximum(out, 0.0).astype(o_ref.dtype)


def timuta_forward(x, params):
    """x: (B, in_dim) float32. params: dict of pre-transposed f32 weights."""
    B, in_dim = x.shape
    n_layers, hid_dim, _ = params["wh"].shape
    out_dim = params["wout"].shape[1]
    assert n_layers >= 1

    # Lane-dense padded feature dims.
    IN_P = _round_up(in_dim, 128)
    H_P = _round_up(hid_dim, 128)
    OUT_P = _round_up(out_dim, 128)

    # Fold LayerNorm gain/bias into the hidden weights (exact in f32):
    #   (LN(h)*g + b) @ W + bl == LN(h) @ (diag(g) @ W) + (b @ W + bl)
    wh_scaled = params["ln_g"].swapaxes(1, 2) * params["wh"]          # (L,hid,hid)
    bh_eff = jnp.matmul(params["ln_b"], params["wh"]) + params["bh"]  # (L,1,hid)

    # VMEM budget estimate (bytes) for a candidate batch tile.
    def vmem_estimate(tb):
        return int(1.5 * (
            2 * 2 * (IN_P * H_P + H_P * OUT_P)   # resident bf16 Win/Wout (x2 buf)
            + 2 * 2 * H_P * H_P                  # streamed bf16 Wl (x2 buffers)
            + 2 * 4 * (2 * H_P + OUT_P)          # f32 biases (x2 buffers)
            + 2 * 4 * tb * (IN_P + OUT_P)        # x / out tiles (x2 buffers)
            + 4 * tb * H_P                       # carried f32 h scratch
        )) + (2 << 20)

    # Batch tile: large enough to amortize per-step overhead and weight
    # re-streaming, shrunk if the VMEM budget would get uncomfortable.
    TB = 256 if B >= 256 else _round_up(B, 8)
    while TB > 8 and vmem_estimate(TB) > 40 * 1024 * 1024:
        TB = max(8, (TB // 2) // 8 * 8)
    BP = _round_up(B, TB)
    vmem_bytes = min(vmem_estimate(TB), 56 * 1024 * 1024)

    # Zero-pad everything (zeros are essential for exact LayerNorm over the
    # padded width) and pre-cast matmul weights to bf16 (halves HBM traffic).
    xp = _pad_to(x, (BP, IN_P))
    win = _pad_to(params["win"], (IN_P, H_P), jnp.bfloat16)
    bin_ = _pad_to(params["bin"], (1, H_P))
    wh = _pad_to(wh_scaled, (n_layers, H_P, H_P), jnp.bfloat16)
    bh = _pad_to(bh_eff, (n_layers, 1, H_P))
    wout = _pad_to(params["wout"], (H_P, OUT_P), jnp.bfloat16)
    bout = _pad_to(params["bout"], (1, OUT_P))

    kernel = functools.partial(timuta_kernel, hid_dim=hid_dim)

    out = pl.pallas_call(
        kernel,
        out_shape=jax.ShapeDtypeStruct((BP, OUT_P), jnp.float32),
        grid_spec=pltpu.PrefetchScalarGridSpec(
            num_scalar_prefetch=0,
            grid=(BP // TB, n_layers),
            in_specs=[
                pl.BlockSpec((TB, IN_P), lambda b, l: (b, 0)),        # x (per batch tile)
                pl.BlockSpec((IN_P, H_P), lambda b, l: (0, 0)),       # Win (resident)
                pl.BlockSpec((1, H_P), lambda b, l: (0, 0)),          # bin (resident)
                pl.BlockSpec((1, H_P, H_P), lambda b, l: (l, 0, 0)),  # Wl' (streamed)
                pl.BlockSpec((1, 1, H_P), lambda b, l: (l, 0, 0)),    # bl' (streamed)
                pl.BlockSpec((H_P, OUT_P), lambda b, l: (0, 0)),      # Wout (resident)
                pl.BlockSpec((1, OUT_P), lambda b, l: (0, 0)),        # bout (resident)
            ],
            out_specs=pl.BlockSpec((TB, OUT_P), lambda b, l: (b, 0)),
            scratch_shapes=[pltpu.VMEM((TB, H_P), jnp.float32)],      # carried h
        ),
        compiler_params=pltpu.CompilerParams(
            dimension_semantics=("parallel", "arbitrary"),
            vmem_limit_bytes=vmem_bytes,
        ),
    )(xp, win, bin_, wh, bh, wout, bout)

    return out[:B, :out_dim]


def init_params(key, in_dim, hid_dim, out_dim, n_hid_layers):
    """Deterministic synthetic parameters (shapes match the PyTorch module)."""
    ks = jax.random.split(key, 8)
    scale = 0.05
    return {
        # nn.Linear(in_dim, hid_dim): weight (hid, in) -> stored transposed (in, hid)
        "win":  scale * jax.random.normal(ks[0], (in_dim, hid_dim), jnp.float32),
        "bin":  scale * jax.random.normal(ks[1], (1, hid_dim), jnp.float32),
        # per-hidden-layer LayerNorm(hid) + Linear(hid, hid), stacked on axis 0
        # (non-trivial gain/bias so the wrapper-side folding is exercised)
        "ln_g": 1.0 + 0.1 * jax.random.normal(ks[2], (n_hid_layers, 1, hid_dim),
                                              jnp.float32),
        "ln_b": 0.05 * jax.random.normal(ks[3], (n_hid_layers, 1, hid_dim),
                                         jnp.float32),
        "wh":   scale * jax.random.normal(ks[4], (n_hid_layers, hid_dim, hid_dim),
                                          jnp.float32),
        "bh":   scale * jax.random.normal(ks[5], (n_hid_layers, 1, hid_dim),
                                          jnp.float32),
        # nn.Linear(hid_dim, out_dim) -> stored transposed (hid, out)
        "wout": scale * jax.random.normal(ks[6], (hid_dim, out_dim), jnp.float32),
        "bout": scale * jax.random.normal(ks[7], (1, out_dim), jnp.float32),
    }


def reference_forward(x, params):
    """Pure-JAX f32 reference of the PyTorch forward (eval mode)."""
    h = x @ params["win"] + params["bin"]
    for i in range(params["wh"].shape[0]):
        mu = jnp.mean(h, axis=-1, keepdims=True)
        var = jnp.mean((h - mu) ** 2, axis=-1, keepdims=True)
        hn = (h - mu) / jnp.sqrt(var + 1e-5)
        hn = hn * params["ln_g"][i] + params["ln_b"][i]
        z = hn @ params["wh"][i] + params["bh"][i]
        h = jnp.maximum(z, 0.0) + h
    out = h @ params["wout"] + params["bout"]
    return jnp.maximum(out, 0.0)


if __name__ == "__main__":
    # Small shapes consistent with the module's forward: x is (batch, in_dim).
    batch, in_dim, hid_dim, out_dim, n_hid_layers = 8, 16, 32, 4, 2

    key = jax.random.PRNGKey(0)
    kx, kp = jax.random.split(key)
    x = jax.random.normal(kx, (batch, in_dim), jnp.float32)
    params = init_params(kp, in_dim, hid_dim, out_dim, n_hid_layers)

    y = timuta_forward(x, params)
    jax.block_until_ready(y)

    assert y.shape == (batch, out_dim) and y.dtype == jnp.float32
    y_ref = reference_forward(x, params)
    assert jnp.allclose(y, y_ref, rtol=5e-2, atol=3e-2), \
        float(jnp.max(jnp.abs(y - y_ref)))
    print("KERNEL_OK")
</pallas_src>

<mosaic_0001>
module attributes {stable_mosaic.version = 11 : i64} {
  func.func @timuta_kernel(%arg0: i32, %arg1: i32, %arg2: memref<8x128xf32, #tpu.memory_space<vmem>>, %arg3: memref<128x128xbf16, #tpu.memory_space<vmem>>, %arg4: memref<1x128xf32, #tpu.memory_space<vmem>>, %arg5: memref<1x128x128xbf16, #tpu.memory_space<vmem>>, %arg6: memref<1x1x128xf32, #tpu.memory_space<vmem>>, %arg7: memref<128x128xbf16, #tpu.memory_space<vmem>>, %arg8: memref<1x128xf32, #tpu.memory_space<vmem>>, %arg9: memref<8x128xf32, #tpu.memory_space<vmem>>, %arg10: memref<8x128xf32, #tpu.memory_space<vmem>>) attributes {dimension_semantics = [#tpu.dimension_semantics<parallel>, #tpu.dimension_semantics<arbitrary>], iteration_bounds = array<i64: 1, 2>, scalar_prefetch = 0 : i64, scratch_operands = 1 : i64, tpu.core_type = #tpu.core_type<tc>, window_params = [{transform_indices = @transform_0, window_bounds = array<i64: 8, 128>}, {pipeline_mode = #tpu.pipeline_mode<synchronous>, transform_indices = @transform_1, window_bounds = array<i64: 128, 128>}, {pipeline_mode = #tpu.pipeline_mode<synchronous>, transform_indices = @transform_2, window_bounds = array<i64: 1, 128>}, {transform_indices = @transform_3, window_bounds = array<i64: 1, 128, 128>}, {transform_indices = @transform_4, window_bounds = array<i64: 1, 1, 128>}, {pipeline_mode = #tpu.pipeline_mode<synchronous>, transform_indices = @transform_5, window_bounds = array<i64: 128, 128>}, {pipeline_mode = #tpu.pipeline_mode<synchronous>, transform_indices = @transform_6, window_bounds = array<i64: 1, 128>}, {transform_indices = @transform_7, window_bounds = array<i64: 8, 128>}]} {
    %c0_i32 = arith.constant 0 : i32
    %0 = arith.cmpi eq, %arg1, %c0_i32 : i32
    %1 = arith.extui %0 : i1 to i32
    %c0_i32_0 = arith.constant 0 : i32
    %2 = arith.cmpi ne, %1, %c0_i32_0 : i32
    scf.if %2 {
      %c0_17 = arith.constant 0 : index
      %c0_18 = arith.constant 0 : index
      %37 = vector.load %arg2[%c0_17, %c0_18] : memref<8x128xf32, #tpu.memory_space<vmem>>, vector<8x128xf32>
      %38 = arith.truncf %37 : vector<8x128xf32> to vector<8x128xbf16>
      %c0_19 = arith.constant 0 : index
      %c0_20 = arith.constant 0 : index
      %39 = vector.load %arg3[%c0_19, %c0_20] : memref<128x128xbf16, #tpu.memory_space<vmem>>, vector<128x128xbf16>
      %cst_21 = arith.constant dense<0.000000e+00> : vector<8x128xf32>
      %40 = tpu.matmul %38, %39, %cst_21 {dimension_numbers = #tpu.dot_dimension_numbers<[1], [0], [0], [1], [0, 0, 1, 1], [], []>} : vector<8x128xbf16>, vector<128x128xbf16>, vector<8x128xf32> -> vector<8x128xf32>
      %c0_22 = arith.constant 0 : index
      %c0_23 = arith.constant 0 : index
      %41 = vector.load %arg4[%c0_22, %c0_23] : memref<1x128xf32, #tpu.memory_space<vmem>>, vector<1x128xf32>
      %42 = vector.broadcast %41 : vector<1x128xf32> to vector<8x128xf32>
      %43 = arith.addf %40, %42 : vector<8x128xf32>
      %c0_24 = arith.constant 0 : index
      %c0_25 = arith.constant 0 : index
      %44 = vector.load %arg10[%c0_24, %c0_25] : memref<8x128xf32, #tpu.memory_space<vmem>>, vector<8x128xf32>
      tpu.vector_store %arg10[%c0_24, %c0_25], %43 {strides = array<i32>} : memref<8x128xf32, #tpu.memory_space<vmem>>, vector<8x128xf32>,
    } else {
    }
    %c0 = arith.constant 0 : index
    %c0_1 = arith.constant 0 : index
    %3 = vector.load %arg10[%c0, %c0_1] : memref<8x128xf32, #tpu.memory_space<vmem>>, vector<8x128xf32>
    %cst = arith.constant dense<0.000000e+00> : vector<8xf32>
    %4 = vector.multi_reduction <add>, %3, %cst [1] : vector<8x128xf32> to vector<8xf32>
    %5 = vector.shape_cast %4 : vector<8xf32> to vector<8x1xf32>
    %6 = arith.mulf %3, %3 : vector<8x128xf32>
    %cst_2 = arith.constant dense<0.000000e+00> : vector<8xf32>
    %7 = vector.multi_reduction <add>, %6, %cst_2 [1] : vector<8x128xf32> to vector<8xf32>
    %8 = vector.shape_cast %7 : vector<8xf32> to vector<8x1xf32>
    %cst_3 = arith.constant 3.125000e-02 : f32
    %9 = vector.broadcast %cst_3 : f32 to vector<8x1xf32>
    %10 = arith.mulf %5, %9 : vector<8x1xf32>
    %cst_4 = arith.constant 3.125000e-02 : f32
    %11 = vector.broadcast %cst_4 : f32 to vector<8x1xf32>
    %12 = arith.mulf %8, %11 : vector<8x1xf32>
    %13 = arith.mulf %10, %10 : vector<8x1xf32>
    %14 = arith.subf %12, %13 : vector<8x1xf32>
    %15 = vector.broadcast %10 : vector<8x1xf32> to vector<8x128xf32>
    %16 = arith.subf %3, %15 : vector<8x128xf32>
    %cst_5 = arith.constant 9.99999974E-6 : f32
    %17 = vector.broadcast %cst_5 : f32 to vector<8x1xf32>
    %18 = arith.addf %14, %17 : vector<8x1xf32>
    %19 = math.rsqrt %18 : vector<8x1xf32>
    %20 = vector.broadcast %19 : vector<8x1xf32> to vector<8x128xf32>
    %21 = arith.mulf %16, %20 : vector<8x128xf32>
    %22 = arith.truncf %21 : vector<8x128xf32> to vector<8x128xbf16>
    %c0_6 = arith.constant 0 : index
    %c0_7 = arith.constant 0 : index
    %c0_8 = arith.constant 0 : index
    %23 = vector.load %arg5[%c0_6, %c0_7, %c0_8] : memref<1x128x128xbf16, #tpu.memory_space<vmem>>, vector<1x128x128xbf16>
    %24 = vector.shape_cast %23 : vector<1x128x128xbf16> to vector<128x128xbf16>
    %cst_9 = arith.constant dense<0.000000e+00> : vector<8x128xf32>
    %25 = tpu.matmul %22, %24, %cst_9 {dimension_numbers = #tpu.dot_dimension_numbers<[1], [0], [0], [1], [0, 0, 1, 1], [], []>} : vector<8x128xbf16>, vector<128x128xbf16>, vector<8x128xf32> -> vector<8x128xf32>
    %c0_10 = arith.constant 0 : index
    %c0_11 = arith.constant 0 : index
    %c0_12 = arith.constant 0 : index
    %26 = vector.load %arg6[%c0_10, %c0_11, %c0_12] : memref<1x1x128xf32, #tpu.memory_space<vmem>>, vector<1x1x128xf32>
    %27 = vector.shape_cast %26 : vector<1x1x128xf32> to vector<1x128xf32>
    %28 = vector.broadcast %27 : vector<1x128xf32> to vector<8x128xf32>
    %29 = arith.addf %25, %28 : vector<8x128xf32>
    %cst_13 = arith.constant 0.000000e+00 : f32
    %30 = vector.broadcast %cst_13 : f32 to vector<8x128xf32>
    %31 = arith.maximumf %29, %30 : vector<8x128xf32>
    %32 = arith.addf %31, %3 : vector<8x128xf32>
    %c0_14 = arith.constant 0 : index
    %c0_15 = arith.constant 0 : index
    %33 = vector.load %arg10[%c0_14, %c0_15] : memref<8x128xf32, #tpu.memory_space<vmem>>, vector<8x128xf32>
    tpu.vector_store %arg10[%c0_14, %c0_15], %32 {strides = array<i32>} : memref<8x128xf32, #tpu.memory_space<vmem>>, vector<8x128xf32>,
    %c1_i32 = arith.constant 1 : i32
    %34 = arith.cmpi eq, %arg1, %c1_i32 : i32
    %35 = arith.extui %34 : i1 to i32
    %c0_i32_16 = arith.constant 0 : i32
    %36 = arith.cmpi ne, %35, %c0_i32_16 : i32
    scf.if %36 {
      %37 = arith.truncf %32 : vector<8x128xf32> to vector<8x128xbf16>
      %c0_17 = arith.constant 0 : index
      %c0_18 = arith.constant 0 : index
      %38 = vector.load %arg7[%c0_17, %c0_18] : memref<128x128xbf16, #tpu.memory_space<vmem>>, vector<128x128xbf16>
      %cst_19 = arith.constant dense<0.000000e+00> : vector<8x128xf32>
      %39 = tpu.matmul %37, %38, %cst_19 {dimension_numbers = #tpu.dot_dimension_numbers<[1], [0], [0], [1], [0, 0, 1, 1], [], []>} : vector<8x128xbf16>, vector<128x128xbf16>, vector<8x128xf32> -> vector<8x128xf32>
      %c0_20 = arith.constant 0 : index
      %c0_21 = arith.constant 0 : index
      %40 = vector.load %arg8[%c0_20, %c0_21] : memref<1x128xf32, #tpu.memory_space<vmem>>, vector<1x128xf32>
      %41 = vector.broadcast %40 : vector<1x128xf32> to vector<8x128xf32>
      %42 = arith.addf %39, %41 : vector<8x128xf32>
      %cst_22 = arith.constant 0.000000e+00 : f32
      %43 = vector.broadcast %cst_22 : f32 to vector<8x128xf32>
      %44 = arith.maximumf %42, %43 : vector<8x128xf32>
      %c0_23 = arith.constant 0 : index
      %c0_24 = arith.constant 0 : index
      %45 = vector.load %arg9[%c0_23, %c0_24] : memref<8x128xf32, #tpu.memory_space<vmem>>, vector<8x128xf32>
      tpu.vector_store %arg9[%c0_23, %c0_24], %44 {strides = array<i32>} : memref<8x128xf32, #tpu.memory_space<vmem>>, vector<8x128xf32>,
    } else {
    }
    return
  }
  func.func @transform_0(%arg0: i32, %arg1: i32) -> (i32, i32) {
    %c0_i32 = arith.constant 0 : i32
    %c0_i32_0 = arith.constant 0 : i32
    return %arg0, %c0_i32 : i32, i32
  }
  func.func @transform_1(%arg0: i32, %arg1: i32) -> (i32, i32) {
    %c0_i32 = arith.constant 0 : i32
    %c0_i32_0 = arith.constant 0 : i32
    %c0_i32_1 = arith.constant 0 : i32
    return %c0_i32, %c0_i32_0 : i32, i32
  }
  func.func @transform_2(%arg0: i32, %arg1: i32) -> (i32, i32) {
    %c0_i32 = arith.constant 0 : i32
    %c0_i32_0 = arith.constant 0 : i32
    %c0_i32_1 = arith.constant 0 : i32
    return %c0_i32, %c0_i32_0 : i32, i32
  }
  func.func @transform_3(%arg0: i32, %arg1: i32) -> (i32, i32, i32) {
    %c0_i32 = arith.constant 0 : i32
    %c0_i32_0 = arith.constant 0 : i32
    %c0_i32_1 = arith.constant 0 : i32
    return %arg1, %c0_i32, %c0_i32_0 : i32, i32, i32
  }
  func.func @transform_4(%arg0: i32, %arg1: i32) -> (i32, i32, i32) {
    %c0_i32 = arith.constant 0 : i32
    %c0_i32_0 = arith.constant 0 : i32
    %c0_i32_1 = arith.constant 0 : i32
    return %arg1, %c0_i32, %c0_i32_0 : i32, i32, i32
  }
  func.func @transform_5(%arg0: i32, %arg1: i32) -> (i32, i32) {
    %c0_i32 = arith.constant 0 : i32
    %c0_i32_0 = arith.constant 0 : i32
    %c0_i32_1 = arith.constant 0 : i32
    return %c0_i32, %c0_i32_0 : i32, i32
  }
  func.func @transform_6(%arg0: i32, %arg1: i32) -> (i32, i32) {
    %c0_i32 = arith.constant 0 : i32
    %c0_i32_0 = arith.constant 0 : i32
    %c0_i32_1 = arith.constant 0 : i32
    return %c0_i32, %c0_i32_0 : i32, i32
  }
  func.func @transform_7(%arg0: i32, %arg1: i32) -> (i32, i32) {
    %c0_i32 = arith.constant 0 : i32
    %c0_i32_0 = arith.constant 0 : i32
    return %arg0, %c0_i32 : i32, i32
  }
}

</mosaic_0001>

<bundles_post_ra>
// kernel: tpu_custom_call.1
= control target key start
LH: loop header
LB: loop body
LE: loop exit
PB: predicated region body
PF: predicated region fallthrough
CT: control target
= control target key end

     0   :  { %s1546_s0 = inlined_call_operand.hbm [shape: f32[8,128], index: 0, kind: input, shape index: {}]   ;;  %s1547_s1 = inlined_call_operand.hbm [shape: bf16[128,128], index: 1, kind: input, shape index: {}]   ;;  %s1548_s2 = inlined_call_operand.vmem [shape: f32[1,128], index: 2, kind: input, shape index: {}]   ;;  %s1549_s3 = inlined_call_operand.hbm [shape: bf16[2,128,128], index: 3, kind: input, shape index: {}]   ;;  %s1550_s4 = inlined_call_operand.vmem [shape: f32[2,1,128], index: 4, kind: input, shape index: {}]   ;;  %s1551_s5 = inlined_call_operand.hbm [shape: bf16[128,128], index: 5, kind: input, shape index: {}]   ;;  %s1552_s6 = inlined_call_operand.vmem [shape: f32[1,128], index: 6, kind: input, shape index: {}]   ;;  %s1553_s7 = inlined_call_operand.hbm [shape: f32[8,128], index: 7, kind: output, shape index: {}]  }
   0x1   :  { %1560 = sst [smem:[#allocation16_spill]] %s1546_s0 }
   0x2   :  { %1561 = sst [smem:[#allocation17_spill]] %s1547_s1 }
   0x3   :  { %12 = vsyncpa [#allocation4], 0 }
   0x4   :  { %13 = vsyncpa [#allocation7], 0 }
   0x5   :  { %14 = vsyncpa [#allocation5], 0  ;;  %s1350_s24 = smov 0   ;;  %s1352_s25 = smov 0  }
   0x6   :  { %s1354_s26 = smov 0   ;;  %s1356_s27 = smov 0  }
   0x7   :  { %s1358_s28 = smov 0   ;;  %s1360_s29 = smov 0  }
   0x8 LB: > { %s1379_s30 = sadd.s32 4294967295, %s1295_s29   ;;  %p114_p0 = scmp.ne.s32.totalorder %s1283_s26, %s1279_s25  ;;  %s1295_s29 = sphi %s1360_s29, %s20_s29   ;;  %s1291_s28 = sphi %s1358_s28, %s1583_s28   ;;  %s1287_s27 = sphi %s1356_s27, %s1582_s27   ;;  %s1283_s26 = sphi %s1354_s26, %s1581_s26   ;;  %s1279_s25 = sphi %s1352_s25, %s1580_s25   ;;  %s1275_s24 = sphi %s1350_s24, %s1579_s24  }
   0x9   : > { %p115_p1 = scmp.eq.s32.totalorder %s1295_s29, 0  ;;  %p120_p2 = scmp.ne.s32.totalorder %s1279_s25, %s1275_s24 }
   0xa   : > { %p1554_p3 = scmp.eq.s32.totalorder %s1379_s30, 0  ;;  %p838_p4 = scmp.ge.s32.totalorder %s1295_s29, 1 }
   0xb   : > { %p116_p5 = por %p115_p1, %p114_p0  ;;  %p225_p6 = scmp.lt.s32.totalorder %s1295_s29, 3 }
   0xc   : > { %p1390_p7 = por %p1554_p3, %p120_p2  ;;  %s1297_s10 = smov [#allocation3]  }
   0xd   : > { %p1394_p8 = pnand %p838_p4, %p225_p6  ;;  %s240_s11 = sshll.u32 %s1297_s10, 4  ;;  %s241_s11 = int_to_ptr.vmem [resolvable:$true] %s240_s11 }
   0xe   : > { %s1562_s8 = scalar_select %p1390_p7, 1, 0 }
   0xf   : > { %s1563_s9 = scalar_select %p1394_p8, 1, 0 }
  0x10   : > { %p990_p9 = pneg %p1394_p8  ;;  %p1007_p10 = scmp.lt.s32.totalorder %s1295_s29, 2 }
  0x11   : > { %s1298_s13 = smov [#allocation6]   ;;  %s1110_s16 = scalar_lea.vmem %s241_s11, 128 }
  0x12   : > { %p1403_p11 = pnand %p990_p9, %p1554_p3  ;;  %s250_s14 = sshll.u32 %s1298_s13, 4  ;;  %s251_s14 = int_to_ptr.vmem [resolvable:$true] %s250_s14 }
  0x13   : > { %p1407_p12 = pnand %p1007_p10, %p116_p5  ;;  %p1111_p0 = scmp.ne.s32.totalorder %s241_s11, %s1110_s16 }
  0x14   : > { %p1101_p13 = pneg %p1403_p11  ;;  %p1118_p4 = scmp.lt.s32.totalorder %s241_s11, %s241_s11 }
  0x15   : > { %s1565_s15 = scalar_select %p1407_p12, 1, 0 }
  0x16   : > { %p1113_p1 = pnand %p1111_p0, %p1101_p13  ;;  %p1119_p6 = scmp.lt.s32.totalorder %s1110_s16, %s1110_s16 }
  0x18   : > { %p1114_p2 = pneg %p1113_p1  ;;  %p1120_p9 = por %p1119_p6, %p1118_p4 }
  0x1a   : > { %p1121_p3 = pnand %p1120_p9, %p1114_p2 }
  0x1c   : > { %1124 = shalt.err (!%p1121_p3)
}
  0x1d   : > { %s1566_s0 = sld [smem:[#allocation16_spill]]  ;;  %s1136_s19 = scalar_lea.vmem %s251_s14, 1024 }
  0x1e   : > { %p1137_p5 = scmp.ne.s32.totalorder %s251_s14, %s1136_s19  ;;  %p1144_p0 = scmp.lt.s32.totalorder %s251_s14, %s251_s14 }
  0x1f   : > { %p1145_p1 = scmp.lt.s32.totalorder %s1136_s19, %s1136_s19 }
  0x20   : > { %p1139_p10 = pnand %p1137_p5, %p1101_p13 }
  0x21   : > { %p1146_p8 = por %p1145_p1, %p1144_p0 }
  0x22   : > { %p1140_p7 = pneg %p1139_p10 }
  0x23   : > { %993 = dma.hbm_to_vmem [thread:$0]  (!%p1403_p11), %s1566_s0, 128, %s241_s11, [#allocation4]  }
  0x24   : > { %p1147_p12 = pnand %p1146_p8, %p1140_p7 }
  0x26   : > { %1150 = shalt.err (!%p1147_p12)
}
  0x27   : > { %s1558_s20 = smov 64   ;;  %s1559_s21 = smov 4  }
  0x28   : > { %s1567_s1 = sld [smem:[#allocation17_spill]]  ;;  %s1301_s24 = smov [#allocation9]  }
  0x29   : > { %s266_s10 = sshll.u32 %s1301_s24, 4  ;;  %s29_s11 = sadd.s32 1, %s1291_s28  ;;  %s267_s10 = int_to_ptr.vmem [resolvable:$true] %s266_s10 }
  0x2a   : > { %s1162_s13 = scalar_lea.vmem %s267_s10, 1024  ;;  %p1170_p12 = scmp.lt.s32.totalorder %s267_s10, %s267_s10 }
  0x2b   : > { %p1163_p3 = scmp.ne.s32.totalorder %s267_s10, %s1162_s13  ;;  %p1171_p2 = scmp.lt.s32.totalorder %s1162_s13, %s1162_s13 }
  0x2d   : > { %p1165_p7 = pnand %p1163_p3, %p1101_p13  ;;  %p1172_p4 = por %p1171_p2, %p1170_p12 }
  0x2e   : > { %996 = dma.hbm_to_vmem [thread:$0]  (!%p1403_p11), %s1567_s1, 1024, %s251_s14, [#allocation7], %s1558_s20, %s1558_s20, %s1559_s21  }
  0x2f   : > { %p1166_p8 = pneg %p1165_p7 }
  0x31   : > { %p1173_p6 = pnand %p1172_p4, %p1166_p8 }
  0x33   : > { %1176 = shalt.err (!%p1173_p6)
}
  0x34   : > { %999 = dma.hbm_to_vmem [thread:$0]  (!%p1403_p11), %s1551_s5, 1024, %s267_s10, [#allocation7], %s1558_s20, %s1558_s20, %s1559_s21  }
  0x35   : > { %p30_p13 = scmp.ge.s32.totalorder %s29_s11, 2  ;;  %s107_s17 = sadd.s32 1, %s1283_s26 }
  0x36   : > { %s283_s18 = sand.u32 1, %s1295_s29   ;;  %s285_s19 = sand.u32 1, %s1283_s26  }
  0x37   : > { %s1585_s11 = smov (%p30_p13, %s29_s11), 0  ;;  %s843_s12 = sshll.u32 %s285_s19, 6 }
  0x38   : > { %s104_s22 = ssub.s32 %s1291_s28, %s1585_s11  ;;  %s884_s23 = sshll.u32 %s1291_s28, 10 }
  0x39   : > { %p105_p9 = scmp.eq.s32.totalorder %s104_s22, 0  ;;  %s293_s14 = scalar_lea.hbm %s1549_s3, %s884_s23 }
  0x3a   : > { %s287_s16 = scalar_lea.vmem [#allocation8], %s843_s12  ;;  %s284_s10 = scalar_lea.sflag [#allocation4], %s283_s18 }
  0x3b   : > { %s294_s0 = sshll.u32 %s287_s16, 4  ;;  %p1568_p11 = scmp.ne.s32.totalorder %s1565_s15, 0  ;;  %s295_s0 = int_to_ptr.vmem [resolvable:$true] %s294_s0 }
  0x3c   : > { %s1456_s1 = scalar_select %p105_p9, %s1283_s26, %s107_s17  }
  0x3d   : > { %p1179_p5 = pneg %p1568_p11  ;;  %s1190_s20 = scalar_lea.vmem %s295_s0, 1024 }
  0x3e   : > { %p1191_p10 = scmp.ne.s32.totalorder %s295_s0, %s1190_s20  ;;  %s1302_s19 = smov [#allocation8]  }
  0x3f   : > { %s1195_s21 = sshll.u32 %s1302_s19, 4  ;;  %s1196_s21 = int_to_ptr.vmem [resolvable:$false] %s1195_s21 }
  0x40   : > { %p1193_p0 = pnand %p1191_p10, %p1179_p5  ;;  %s1197_s22 = scalar_lea.vmem %s1196_s21, 2048 }
  0x41   : > { %p1198_p3 = scmp.lt.s32.totalorder %s295_s0, %s1196_s21  ;;  %p1199_p7 = scmp.lt.s32.totalorder %s1197_s22, %s1190_s20 }
  0x42   : > { %p1194_p1 = pneg %p1193_p0 }
  0x43   : > { %p1200_p8 = por %p1199_p7, %p1198_p3 }
  0x45   : > { %p1201_p12 = pnand %p1200_p8, %p1194_p1 }
  0x47   : > { %1204 = shalt.err (!%p1201_p12)
}
  0x48   : > { %s1569_s17 = smov 4   ;;  %s1570_s12 = smov 64  }
  0x49   : > { %1003 = dma.hbm_to_vmem [thread:$0]  (!%p1568_p11), %s293_s14, 1024, %s295_s0, %s284_s10, %s1570_s12, %s1570_s12, %s1569_s17  }
  0x4a   : > { %p1571_p2 = scmp.ne.s32.totalorder %s1563_s9, 0 }
  0x4b   : > { %p1572_p4 = scmp.eq.s32.totalorder (!%p1571_p2), %s1379_s30, 0 }
  0x4c   : > { %312 = sbr.rel (%p1571_p2) target bundleno = 950 (0x3b6), region = 48 }
  0x51   : > { %1254 = dma.done.wait (%p1572_p4), [#allocation4], 128   ;;  %p1573_p6 = pmov %p1572_p4 }
  0x52   : > { %p1574_p13 = pmov %p1572_p4 }
  0x53   : > { %1256 = vsyncadd (%p1573_p6), [#allocation4], 4294967168 }
  0x54   : > { %1258 = dma.done.wait (%p1574_p13), [#allocation7], 1024   ;;  %p1575_p9 = pmov %p1572_p4 }
  0x55   : > { %s322_s15 = sand.u32 1, %s1379_s30   ;;  %s324_s0 = sand.u32 1, %s1279_s25  }
  0x56   : > { %1260 = vsyncadd (%p1575_p9), [#allocation7], 4294966272  ;;  %s849_s20 = sshll.u32 %s324_s0, 6  ;;  %s323_s9 = scalar_lea.sflag [#allocation4], %s322_s15 }
  0x57   : > { %s1477_s21 = scalar_lea.vmem [#allocation8], %s849_s20  ;;  %p1576_p11 = scmp.ne.s32.totalorder %s1562_s8, 0 }
  0x59   : > { %1262 = dma.done.wait (%p1576_p11), %s323_s9, 1024  }
  0x5a   : > { %1264 = vsyncadd (%p1576_p11), %s323_s9, 4294966272  ;;  %p1577_p5 = pmov %p1572_p4 }
  0x5b   : > { %p1578_p10 = pmov %p1572_p4 }
  0x5c   : > { %1266 = dma.done.wait (%p1577_p5), [#allocation7], 1024  }
  0x5d   : > { %1268 = vsyncadd (%p1578_p10), [#allocation7], 4294966272  ;;  %p359_p0 = scmp.lt.s32.totalorder %s1287_s27, 1  ;;  %p851_p1 = scmp.ne.s32.totalorder %s1287_s27, 0 }
  0x5f   : > { %s1489_s18 = scalar_select %p359_p0, %s1287_s27, 1 }
  0x60   : > { %366 = sbr.rel (%p851_p1) target bundleno = 333 (0x14d), region = 68 }
  0x61   : > { %s361_s13 = scalar_lea.vmem %s1550_s4, %s1489_s18 }
  0x65   : > { %v1073_v0 = vld [vmem:[#allocation6 + $0x38] sm:$0xff]   ;;  %v1303_v1 = vmov 0.0   ;;  %v1074_v2 = vld [vmem:[#allocation6 + $0x30] sm:$0xff]   ;;  %vm1304_vm0 = vmmov 0   ;;  %v1075_v3 = vld [vmem:[#allocation6 + $0x28] sm:$0xff]  }
  0x66   : > { %912 = vmatprep.subr.bf16.mxu0 %v1303_v1  ;;  %928 = vmatprep.mubr.msk.bf16.mxu0 %vm1304_vm0, %v1303_v1  ;;  %v1076_v4 = vld [vmem:[#allocation6 + $0x20] sm:$0xff]   ;;  %v1077_v5 = vld [vmem:[#allocation6 + $0x18] sm:$0xff]   ;;  %v1078_v6 = vld [vmem:[#allocation6 + $0x10] sm:$0xff]  }
  0x67   : > { %913 = vmatpush3.bf16.msra.mxu0 %v1073_v0  ;;  %v1079_v7 = vld [vmem:[#allocation6 + $0x8] sm:$0xff]   ;;  %v1080_v8 = vld [vmem:[#allocation6] sm:$0xff]   ;;  %v367_v9 = vld [vmem:[#allocation3] sm:$0xff] }
  0x68   : > { %914 = vmatprep.subr.bf16.mxu0 %v1303_v1  ;;  %v368_v10 = vpack.c.bf16 %v367_v9, %v367_v9  ;;  %v852_v11 = vld [vmem:[%s1548_s2] ss:$0 sm:$0xff] }
  0x6b   : > { %915 = vmatpush3.bf16.msra.mxu0 %v1074_v2 }
  0x6c   : > { %916 = vmatprep.subr.bf16.mxu0 %v1303_v1 }
  0x6f   : > { %917 = vmatpush3.bf16.msra.mxu0 %v1075_v3 }
  0x70   : > { %918 = vmatprep.subr.bf16.mxu0 %v1303_v1 }
  0x73   : > { %919 = vmatpush3.bf16.msra.mxu0 %v1076_v4 }
  0x74   : > { %920 = vmatprep.subr.bf16.mxu0 %v1303_v1 }
  0x77   : > { %921 = vmatpush3.bf16.msra.mxu0 %v1077_v5 }
  0x78   : > { %922 = vmatprep.subr.bf16.mxu0 %v1303_v1 }
  0x7b   : > { %923 = vmatpush3.bf16.msra.mxu0 %v1078_v6 }
  0x7c   : > { %924 = vmatprep.subr.bf16.mxu0 %v1303_v1 }
  0x7f   : > { %925 = vmatpush3.bf16.msra.mxu0 %v1079_v7 }
  0x80   : > { %926 = vmatprep.subr.bf16.mxu0 %v1303_v1 }
  0x83   : > { %927 = vmatpush3.bf16.msra.mxu0 %v1080_v8 }
  0x86   : > { %929 = vmatmul.mubr.bf16.vlgmr.msra.gmra.mxu0 %v368_v10 }
 0x146   : > { %v474_v12 = vpop.f32.mrf.mxu0 }
 0x147   : > { %v475_v13 = vadd.f32 %v852_v11, %v474_v12 }
 0x148   : > { %v930_v14 = vpop.f32.mrf.mxu0 }
 0x149   : > { %480 = vst [vmem:[#allocation2] sm:$0xff] %v475_v13 }
 0x14a   : > { %v477_v15 = vpop.f32.mrf.mxu0 }
 0x14c   : > { %v931_v16 = vpop.f32.mrf.mxu0 }
 0x14d PF: > { %v1305_v19 = vmov 0.0   ;;  %v1081_v20 = vld [vmem:[%s1477_s21 + $0x38] sm:$0xff]   ;;  %v1082_v21 = vld [vmem:[%s1477_s21 + $0x30] sm:$0xff]   ;;  %v1083_v22 = vld [vmem:[%s1477_s21 + $0x28] sm:$0xff]   ;;  %vm1306_vm1 = vmmov 0   ;;  %p870_p3 = scmp.ne.s32.totalorder %s1287_s27, 1 }
 0x14e   : > { %932 = vmatprep.subr.bf16.mxu0 %v1305_v19  ;;  %v1084_v23 = vld [vmem:[%s1477_s21 + $0x20] sm:$0xff]   ;;  %v1085_v24 = vld [vmem:[%s1477_s21 + $0x18] sm:$0xff]   ;;  %948 = vmatprep.mubr.msk.bf16.mxu0 %vm1306_vm1, %v1305_v19  ;;  %v1086_v25 = vld [vmem:[%s1477_s21 + $0x10] sm:$0xff]  }
 0x14f   : > { %933 = vmatpush3.bf16.msra.mxu0 %v1081_v20  ;;  %v1087_v26 = vld [vmem:[%s1477_s21 + $0x8] sm:$0xff]   ;;  %v1088_v27 = vld [vmem:[%s1477_s21] sm:$0xff]   ;;  %v861_v39 = vld [vmem:[%s361_s13] ss:$0 sm:$0xff] }
 0x150   : > { %v481_v17 = vld [vmem:[#allocation2] sm:$0xff]  ;;  %934 = vmatprep.subr.bf16.mxu0 %v1305_v19 }
 0x151   : > { %482 = vadd.xlane.f32.xlu0 %v481_v17  ;;  %v484_v18 = vmul.f32 %v481_v17, %v481_v17 }
 0x153   : > { %935 = vmatpush3.bf16.msra.mxu0 %v1082_v21 }
 0x154   : > { %936 = vmatprep.subr.bf16.mxu0 %v1305_v19 }
 0x155   : > { %485 = vadd.xlane.f32.xlu0 %v484_v18 }
 0x157   : > { %937 = vmatpush3.bf16.msra.mxu0 %v1083_v22 }
 0x158   : > { %938 = vmatprep.subr.bf16.mxu0 %v1305_v19 }
 0x15b   : > { %939 = vmatpush3.bf16.msra.mxu0 %v1084_v23 }
 0x15c   : > { %940 = vmatprep.subr.bf16.mxu0 %v1305_v19 }
 0x15f   : > { %941 = vmatpush3.bf16.msra.mxu0 %v1085_v24 }
 0x160   : > { %942 = vmatprep.subr.bf16.mxu0 %v1305_v19 }
 0x163   : > { %943 = vmatpush3.bf16.msra.mxu0 %v1086_v25 }
 0x164   : > { %944 = vmatprep.subr.bf16.mxu0 %v1305_v19 }
 0x167   : > { %945 = vmatpush3.bf16.msra.mxu0 %v1087_v26 }
 0x168   : > { %946 = vmatprep.subr.bf16.mxu0 %v1305_v19 }
 0x16b   : > { %947 = vmatpush3.bf16.msra.mxu0 %v1088_v27 }
 0x1da   : > { %v483_v28 = vpop.xlane.xlu0 %482 }
 0x1db   : > { %v487_v29 = vmul.f32 0.03125, %v483_v28 }
 0x1dd   : > { %v489_v31 = vmul.f32 %v487_v29, %v487_v29  ;;  %v491_v35 = vsub.f32 %v481_v17, %v487_v29 }
 0x1de   : > { %v486_v30 = vpop.xlane.xlu0 %485 }
 0x1df   : > { %v488_v32 = vmul.f32 0.03125, %v486_v30 }
 0x1e1   : > { %v490_v33 = vsub.f32 %v488_v32, %v489_v31 }
 0x1e3   : > { %v492_v34 = vadd.f32 1e-05, %v490_v33 }
 0x1e5   : > { %1089 = vrsqrt.f32 %v492_v34 }
 0x1f2   : > { %v1090_v36 = vpop.eup %1089 }
 0x1f3   : > { %v494_v37 = vmul.f32 %v1090_v36, %v491_v35 }
 0x1f5   : > { %v495_v38 = vpack.c.bf16 %v494_v37, %v494_v37 }
 0x1f7   : > { %949 = vmatmul.mubr.bf16.vlgmr.msra.gmra.mxu0 %v495_v38 }
 0x2b7   : > { %v601_v40 = vpop.f32.mrf.mxu0 }
 0x2b8   : > { %v602_v41 = vadd.f32 %v861_v39, %v601_v40 }
 0x2b9   : > { %v950_v42 = vpop.f32.mrf.mxu0 }
 0x2ba   : > { %v607_v43 = vmax.f32 %v602_v41, 0.0  ;;  %613 = sbr.rel (%p870_p3) target bundleno = 935 (0x3a7), region = 72 }
 0x2bb   : > { %v604_v44 = vpop.f32.mrf.mxu0 }
 0x2bc   : > { %v608_v45 = vadd.f32 %v607_v43, %v481_v17 }
 0x2bd   : > { %v951_v46 = vpop.f32.mrf.mxu0 }
 0x2be   : > { %609 = vst [vmem:[#allocation2] sm:$0xff] %v608_v45 }
 0x2bf   : > { %v1091_v47 = vld [vmem:[#allocation9 + $0x38] sm:$0xff]   ;;  %v1307_v48 = vmov 0.0   ;;  %v1092_v49 = vld [vmem:[#allocation9 + $0x30] sm:$0xff]   ;;  %vm1308_vm2 = vmmov 0   ;;  %v1093_v50 = vld [vmem:[#allocation9 + $0x28] sm:$0xff]   ;;  %v614_v56 = vpack.c.bf16 %v608_v45, %v608_v45 }
 0x2c0   : > { %952 = vmatprep.subr.bf16.mxu0 %v1307_v48  ;;  %968 = vmatprep.mubr.msk.bf16.mxu0 %vm1308_vm2, %v1307_v48  ;;  %v1094_v51 = vld [vmem:[#allocation9 + $0x20] sm:$0xff]   ;;  %v1095_v52 = vld [vmem:[#allocation9 + $0x18] sm:$0xff]   ;;  %v1096_v53 = vld [vmem:[#allocation9 + $0x10] sm:$0xff]  }
 0x2c1   : > { %953 = vmatpush3.bf16.msra.mxu0 %v1091_v47  ;;  %v1097_v54 = vld [vmem:[#allocation9 + $0x8] sm:$0xff]   ;;  %v1098_v55 = vld [vmem:[#allocation9] sm:$0xff]   ;;  %v871_v57 = vld [vmem:[%s1552_s6] ss:$0 sm:$0xff] }
 0x2c2   : > { %954 = vmatprep.subr.bf16.mxu0 %v1307_v48 }
 0x2c5   : > { %955 = vmatpush3.bf16.msra.mxu0 %v1092_v49 }
 0x2c6   : > { %956 = vmatprep.subr.bf16.mxu0 %v1307_v48 }
 0x2c9   : > { %957 = vmatpush3.bf16.msra.mxu0 %v1093_v50 }
 0x2ca   : > { %958 = vmatprep.subr.bf16.mxu0 %v1307_v48 }
 0x2cd   : > { %959 = vmatpush3.bf16.msra.mxu0 %v1094_v51 }
 0x2ce   : > { %960 = vmatprep.subr.bf16.mxu0 %v1307_v48 }
 0x2d1   : > { %961 = vmatpush3.bf16.msra.mxu0 %v1095_v52 }
 0x2d2   : > { %962 = vmatprep.subr.bf16.mxu0 %v1307_v48 }
 0x2d5   : > { %963 = vmatpush3.bf16.msra.mxu0 %v1096_v53 }
 0x2d6   : > { %964 = vmatprep.subr.bf16.mxu0 %v1307_v48 }
 0x2d9   : > { %965 = vmatpush3.bf16.msra.mxu0 %v1097_v54 }
 0x2da   : > { %966 = vmatprep.subr.bf16.mxu0 %v1307_v48 }
 0x2dd   : > { %967 = vmatpush3.bf16.msra.mxu0 %v1098_v55 }
 0x2e0   : > { %969 = vmatmul.mubr.bf16.vlgmr.msra.gmra.mxu0 %v614_v56 }
 0x3a0   : > { %v720_v58 = vpop.f32.mrf.mxu0 }
 0x3a1   : > { %v721_v59 = vadd.f32 %v871_v57, %v720_v58 }
 0x3a2   : > { %v970_v60 = vpop.f32.mrf.mxu0 }
 0x3a3   : > { %v726_v61 = vmax.f32 %v721_v59, 0.0 }
 0x3a4   : > { %v723_v62 = vpop.f32.mrf.mxu0 }
 0x3a5   : > { %727 = vst [vmem:[#allocation10] sm:$0xff] %v726_v61 }
 0x3a6   : > { %v971_v63 = vpop.f32.mrf.mxu0 }
 0x3a7 PF: > { %p1011_p7 = scmp.eq.s32.totalorder %s1379_s30, 1  ;;  %s1309_s22 = smov [#allocation10]  }
 0x3a8   : > { %s737_s17 = sshll.u32 %s1309_s22, 4  ;;  %s738_s17 = int_to_ptr.vmem [resolvable:$true] %s737_s17 }
 0x3a9   : > { %s1205_s12 = scalar_lea.vmem %s738_s17, 128  ;;  %p1212_p4 = scmp.lt.s32.totalorder %s738_s17, %s738_s17 }
 0x3aa   : > { %p1206_p8 = scmp.ne.s32.totalorder %s738_s17, %s1205_s12  ;;  %p1213_p6 = scmp.lt.s32.totalorder %s1205_s12, %s1205_s12 }
 0x3ac   : > { %p1207_p12 = pnand %p1206_p8, %p1011_p7  ;;  %p1214_p13 = por %p1213_p6, %p1212_p4 }
 0x3ae   : > { %p1208_p2 = pneg %p1207_p12 }
 0x3b0   : > { %p1215_p9 = pnand %p1214_p13, %p1208_p2 }
 0x3b2   : > { %1218 = shalt.err (!%p1215_p9)
}
 0x3b3   : > { %987 = dma.vmem_to_hbm [thread:$0]  (%p1011_p7), %s738_s17, 128, %s1553_s7, [#allocation5]  }
 0x3b4   : > { %1270 = dma.done.wait (%p1011_p7), [#allocation5], 128  }
 0x3b5   : > { %1272 = vsyncadd (%p1011_p7), [#allocation5], 4294967168 }
 0x3b6 PF: > { %s20_s29 = sadd.s32 1, %s1295_s29   ;;  %s1579_s24 = smov %s1279_s25 }
 0x3b7   : > { %p17_p11 = scmp.ge.s32.totalorder %s20_s29, 4   ;;  %s1580_s25 = smov %s1283_s26 }
 0x3b8   : > { %s1581_s26 = smov %s1456_s1  ;;  %s1582_s27 = smov %s1291_s28 }
 0x3b9   : > { %s1583_s28 = smov %s1585_s11  ;;  %19 = sbr.rel (!%p17_p11) target bundleno = 8 (0x8), region = 109 }
 0x3be   :  { %750 = vsyncpa [#allocation4], 1 }
 0x3bf   :  { %752 = vsyncpa [#allocation4 + $0x1], 1 }
 0x3c0   :  { %753 = vsyncpa [#allocation7], 1 }
 0x3c1   :  { %754 = vsyncpa [#allocation5], 1 }
 0x3c2   :  { %756 = vsyncpa [#allocation5 + $0x1], 1 }

</bundles_post_ra>
